<compile_context>
chip_gen: v6e
topology: v6e:2x2x1
jax: 0.10.0
libtpu: 0.0.40
codegen_flags: <defaults>
</compile_context>

<pallas_src>
import functools
import math

import jax
import jax.numpy as jnp
from jax.experimental import pallas as pl
from jax.experimental.pallas import tpu as pltpu

LANES = 128  # packed feature width == one vreg lane dimension


def _fused_actor_critic_kernel(x_ref, w_ref, aux_ref, out_ref, *, action_dim):
    """Fused forward on one (block_b, 128) batch tile.

    x_ref   : (block_b, 128)  lanes [0,A)      = N(0,1) noise
                              lanes [A, A+S)   = observation, rest zero
    w_ref   : (384, 128)      rows [  0,128) = W1   (packed [w1a | w1c], obs rows only)
                              rows [128,256) = W2   (block-diag [w2a ; w2c])
                              rows [256,384) = Whead(block-diag [wact ; wcrit])
    aux_ref : (4, 128)        row 0 = b1, row 1 = b2,
                              row 2 = bhead (with -logprob_const folded into lane A),
                              row 3 = std  (lanes [0,A), zero elsewhere)
    out_ref : (block_b, 128)  lanes [0,A) action, lane A log_prob, lane A+1 value
    """
    A = action_dim
    x = x_ref[...]
    aux = aux_ref[...]
    b1 = aux[0:1, :]
    b2 = aux[1:2, :]
    bh = aux[2:3, :]
    std_row = aux[3:4, :]

    # Layer 1, actor+critic fused to 128 lanes. Zero rows of W1 kill the noise
    # lanes, so the packed [noise|obs] slab multiplies correctly.
    h1 = jnp.tanh(
        jnp.dot(x, w_ref[0:LANES, :], preferred_element_type=jnp.float32) + b1)
    # Layer 2: block-diagonal [w2a 0 ; 0 w2c].
    h2 = jnp.tanh(
        jnp.dot(h1, w_ref[LANES:2 * LANES, :],
                preferred_element_type=jnp.float32) + b2)
    # Heads: block-diagonal -> lanes [0,A) = fc_action pre-activation,
    # lane A = -logprob_const (from bias), lane A+1 = value, rest 0.
    head = jnp.dot(h2, w_ref[2 * LANES:3 * LANES, :],
                   preferred_element_type=jnp.float32) + bh

    lane = jax.lax.broadcasted_iota(jnp.int32, head.shape, dimension=1)
    is_act = lane < A
    # tanh only on the action lanes; value / const lanes pass through untouched.
    base = jnp.where(is_act, jnp.tanh(head), head)

    # action   = mean + std * noise  (std_row and x are zero outside action lanes)
    # log_prob = -0.5*sum(noise^2) - sum(log std) - 0.5*A*log(2*pi)
    #            (constant part already sits in head lane A via the bias)
    noise = jnp.where(is_act, x, 0.0)
    ssq = jnp.sum(noise * noise, axis=1, keepdims=True)
    out = base + std_row * x + jnp.where(lane == A, -0.5 * ssq, 0.0)
    out_ref[...] = out


def pack_params(params, state_dim, action_dim, hidden):
    """Host-side, one-time packing of all parameters into two dense buffers."""
    A, S, H = action_dim, state_dim, hidden
    assert 2 * H <= LANES and A + S <= LANES and A + 2 <= LANES
    f32 = jnp.float32

    w1 = jnp.zeros((LANES, LANES), f32)
    w1 = w1.at[A:A + S, :H].set(params["w1a"])
    w1 = w1.at[A:A + S, H:2 * H].set(params["w1c"])

    w2 = jnp.zeros((LANES, LANES), f32)
    w2 = w2.at[:H, :H].set(params["w2a"])
    w2 = w2.at[H:2 * H, H:2 * H].set(params["w2c"])

    wh = jnp.zeros((LANES, LANES), f32)
    wh = wh.at[:H, :A].set(params["wact"])
    wh = wh.at[H:2 * H, A + 1:A + 2].set(params["wcrit"])

    w_packed = jnp.concatenate([w1, w2, wh], axis=0)  # (384, 128)

    std = params["std"][0]  # (A,)
    lp_const = jnp.sum(jnp.log(std)) + 0.5 * A * math.log(2.0 * math.pi)

    b1 = (jnp.zeros((LANES,), f32)
          .at[:H].set(params["b1a"][0]).at[H:2 * H].set(params["b1c"][0]))
    b2 = (jnp.zeros((LANES,), f32)
          .at[:H].set(params["b2a"][0]).at[H:2 * H].set(params["b2c"][0]))
    bh = (jnp.zeros((LANES,), f32)
          .at[:A].set(params["bact"][0])
          .at[A + 1].set(params["bcrit"][0, 0])
          .at[A].set(-lp_const))
    std_row = jnp.zeros((LANES,), f32).at[:A].set(std)

    aux = jnp.stack([b1, b2, bh, std_row], axis=0)  # (4, 128)
    return w_packed, aux


@functools.partial(jax.jit, static_argnames=("state_dim", "action_dim"))
def gaussian_actor_critic_forward(obs, noise, w_packed, aux, *, state_dim,
                                  action_dim):
    """Full forward pass; parameters must be pre-packed with pack_params()."""
    B = obs.shape[0]
    A = action_dim
    f32 = jnp.float32

    # Pack per-step data into one lane-dense (B, 128) slab: [noise | obs | 0].
    x = jnp.zeros((B, LANES), f32)
    x = x.at[:, :A].set(noise.astype(f32))
    x = x.at[:, A:A + state_dim].set(obs.astype(f32))

    block_b = B if B <= 512 else 512
    grid = (pl.cdiv(B, block_b),)

    kernel = functools.partial(_fused_actor_critic_kernel, action_dim=A)
    slab = pl.pallas_call(
        kernel,
        out_shape=jax.ShapeDtypeStruct((B, LANES), f32),
        grid=grid,
        in_specs=[
            pl.BlockSpec((block_b, LANES), lambda i: (i, 0)),       # data tile
            pl.BlockSpec((3 * LANES, LANES), lambda i: (0, 0)),     # weights, VMEM-resident
            pl.BlockSpec((4, LANES), lambda i: (0, 0)),             # biases/std, VMEM-resident
        ],
        out_specs=pl.BlockSpec((block_b, LANES), lambda i: (i, 0)),
        compiler_params=pltpu.CompilerParams(
            dimension_semantics=("parallel",)),
    )(x, w_packed, aux)

    action = slab[:, :A]
    log_prob = slab[:, A:A + 1]
    value = slab[:, A + 1:A + 2]
    entropy = jnp.zeros((B, 1), f32)  # module returns zeros(B, 1)
    return action, log_prob, entropy, value


def init_params(key, state_dim, action_dim, hidden):
    """Deterministic synthetic parameters (shapes match the PyTorch module)."""
    ks = jax.random.split(key, 6)
    f32 = jnp.float32

    def lin(k, din, dout, scale=1.0):
        # stand-in for orthogonal init; deterministic and correctly shaped
        w = jax.random.normal(k, (din, dout), f32) * (scale / jnp.sqrt(din))
        b = jnp.zeros((1, dout), f32)
        return w, b

    w1a, b1a = lin(ks[0], state_dim, hidden)
    w2a, b2a = lin(ks[1], hidden, hidden)
    w1c, b1c = lin(ks[2], state_dim, hidden)
    w2c, b2c = lin(ks[3], hidden, hidden)
    wact, bact = lin(ks[4], hidden, action_dim, scale=1e-3)
    wcrit, bcrit = lin(ks[5], hidden, 1, scale=1e-3)
    std = jnp.ones((1, action_dim), f32)  # nn.Parameter(torch.ones(1, action_dim))

    return dict(
        w1a=w1a, b1a=b1a, w2a=w2a, b2a=b2a,
        w1c=w1c, b1c=b1c, w2c=w2c, b2c=b2c,
        wact=wact, bact=bact, wcrit=wcrit, bcrit=bcrit,
        std=std,
    )


def reference_forward(obs, noise, params):
    """Pure-JAX reference mirroring the PyTorch module."""
    ha = jnp.tanh(obs @ params["w1a"] + params["b1a"])
    ha = jnp.tanh(ha @ params["w2a"] + params["b2a"])
    hc = jnp.tanh(obs @ params["w1c"] + params["b1c"])
    hc = jnp.tanh(hc @ params["w2c"] + params["b2c"])
    mean = jnp.tanh(ha @ params["wact"] + params["bact"])
    v = hc @ params["wcrit"] + params["bcrit"]
    std = params["std"]
    action = mean + std * noise
    lp = (-((action - mean) ** 2) / (2.0 * std * std) - jnp.log(std)
          - 0.5 * jnp.log(2.0 * jnp.pi))
    log_prob = jnp.sum(lp, axis=1, keepdims=True)
    return action, log_prob, jnp.zeros((obs.shape[0], 1), jnp.float32), v


if __name__ == "__main__":
    state_dim = 33   # Config.state_dim
    action_dim = 4   # Config.action_dim
    hidden = 64      # FCBody default hidden width
    batch = 8

    key = jax.random.PRNGKey(0)
    k_obs, k_par, k_noise = jax.random.split(key, 3)

    obs = jax.random.normal(k_obs, (batch, state_dim), jnp.float32)
    params = init_params(k_par, state_dim, action_dim, hidden)
    # dist.sample() is stochastic in torch; here standard-normal noise is
    # generated outside and the kernel computes action = mean + std * noise.
    noise = jax.random.normal(k_noise, (batch, action_dim), jnp.float32)

    w_packed, aux = pack_params(params, state_dim, action_dim, hidden)

    action, log_prob, entropy, value = gaussian_actor_critic_forward(
        obs, noise, w_packed, aux, state_dim=state_dim, action_dim=action_dim)
    jax.block_until_ready((action, log_prob, entropy, value))

    assert action.shape == (batch, action_dim)
    assert log_prob.shape == (batch, 1)
    assert entropy.shape == (batch, 1)
    assert value.shape == (batch, 1)

    ra, rlp, rent, rv = reference_forward(obs, noise, params)
    assert bool(jnp.allclose(action, ra, atol=1e-2, rtol=1e-2))
    assert bool(jnp.allclose(log_prob, rlp, atol=1e-2, rtol=1e-2))
    assert bool(jnp.allclose(value, rv, atol=1e-2, rtol=1e-2))
    assert bool(jnp.all(entropy == 0.0))

    print("KERNEL_OK")
</pallas_src>

<mosaic_0001>
module attributes {stable_mosaic.version = 11 : i64} {
  func.func @_fused_actor_critic_kernel(%arg0: i32, %arg1: memref<8x128xf32, #tpu.memory_space<vmem>>, %arg2: memref<384x128xf32, #tpu.memory_space<vmem>>, %arg3: memref<4x128xf32, #tpu.memory_space<vmem>>, %arg4: memref<8x128xf32, #tpu.memory_space<vmem>>) attributes {dimension_semantics = [#tpu.dimension_semantics<parallel>], iteration_bounds = array<i64: 1>, scalar_prefetch = 0 : i64, scratch_operands = 0 : i64, tpu.core_type = #tpu.core_type<tc>, window_params = [{transform_indices = @transform_0, window_bounds = array<i64: 8, 128>}, {pipeline_mode = #tpu.pipeline_mode<synchronous>, transform_indices = @transform_1, window_bounds = array<i64: 384, 128>}, {pipeline_mode = #tpu.pipeline_mode<synchronous>, transform_indices = @transform_2, window_bounds = array<i64: 4, 128>}, {transform_indices = @transform_3, window_bounds = array<i64: 8, 128>}]} {
    %c0 = arith.constant 0 : index
    %c0_0 = arith.constant 0 : index
    %0 = vector.load %arg1[%c0, %c0_0] : memref<8x128xf32, #tpu.memory_space<vmem>>, vector<8x128xf32>
    %c0_1 = arith.constant 0 : index
    %c0_2 = arith.constant 0 : index
    %1 = vector.load %arg3[%c0_1, %c0_2] : memref<4x128xf32, #tpu.memory_space<vmem>>, vector<4x128xf32>
    %2 = vector.extract_strided_slice %1 {offsets = [0, 0], sizes = [1, 128], strides = [1, 1]} : vector<4x128xf32> to vector<1x128xf32>
    %3 = vector.extract_strided_slice %1 {offsets = [1, 0], sizes = [1, 128], strides = [1, 1]} : vector<4x128xf32> to vector<1x128xf32>
    %4 = vector.extract_strided_slice %1 {offsets = [2, 0], sizes = [1, 128], strides = [1, 1]} : vector<4x128xf32> to vector<1x128xf32>
    %5 = vector.extract_strided_slice %1 {offsets = [3, 0], sizes = [1, 128], strides = [1, 1]} : vector<4x128xf32> to vector<1x128xf32>
    %c0_3 = arith.constant 0 : index
    %c0_4 = arith.constant 0 : index
    %6 = vector.load %arg2[%c0_3, %c0_4] : memref<384x128xf32, #tpu.memory_space<vmem>>, vector<128x128xf32>
    %cst = arith.constant dense<0.000000e+00> : vector<8x128xf32>
    %7 = tpu.matmul %0, %6, %cst {dimension_numbers = #tpu.dot_dimension_numbers<[1], [0], [0], [1], [0, 0, 1, 1], [], []>} : vector<8x128xf32>, vector<128x128xf32>, vector<8x128xf32> -> vector<8x128xf32>
    %8 = vector.broadcast %2 : vector<1x128xf32> to vector<8x128xf32>
    %9 = arith.addf %7, %8 : vector<8x128xf32>
    %10 = math.tanh %9 : vector<8x128xf32>
    %c128 = arith.constant 128 : index
    %c0_5 = arith.constant 0 : index
    %11 = vector.load %arg2[%c128, %c0_5] : memref<384x128xf32, #tpu.memory_space<vmem>>, vector<128x128xf32>
    %cst_6 = arith.constant dense<0.000000e+00> : vector<8x128xf32>
    %12 = tpu.matmul %10, %11, %cst_6 {dimension_numbers = #tpu.dot_dimension_numbers<[1], [0], [0], [1], [0, 0, 1, 1], [], []>} : vector<8x128xf32>, vector<128x128xf32>, vector<8x128xf32> -> vector<8x128xf32>
    %13 = vector.broadcast %3 : vector<1x128xf32> to vector<8x128xf32>
    %14 = arith.addf %12, %13 : vector<8x128xf32>
    %15 = math.tanh %14 : vector<8x128xf32>
    %c256 = arith.constant 256 : index
    %c0_7 = arith.constant 0 : index
    %16 = vector.load %arg2[%c256, %c0_7] : memref<384x128xf32, #tpu.memory_space<vmem>>, vector<128x128xf32>
    %cst_8 = arith.constant dense<0.000000e+00> : vector<8x128xf32>
    %17 = tpu.matmul %15, %16, %cst_8 {dimension_numbers = #tpu.dot_dimension_numbers<[1], [0], [0], [1], [0, 0, 1, 1], [], []>} : vector<8x128xf32>, vector<128x128xf32>, vector<8x128xf32> -> vector<8x128xf32>
    %18 = vector.broadcast %4 : vector<1x128xf32> to vector<8x128xf32>
    %19 = arith.addf %17, %18 : vector<8x128xf32>
    %20 = tpu.iota {dimensions = array<i32: 1>} : vector<8x128xi32>
    %c4_i32 = arith.constant 4 : i32
    %21 = vector.broadcast %c4_i32 : i32 to vector<8x128xi32>
    %22 = arith.cmpi slt, %20, %21 : vector<8x128xi32>
    %23 = math.tanh %19 : vector<8x128xf32>
    %24 = arith.select %22, %23, %19 : vector<8x128xi1>, vector<8x128xf32>
    %cst_9 = arith.constant 0.000000e+00 : f32
    %25 = vector.broadcast %cst_9 : f32 to vector<8x128xf32>
    %26 = arith.select %22, %0, %25 : vector<8x128xi1>, vector<8x128xf32>
    %27 = arith.mulf %26, %26 : vector<8x128xf32>
    %cst_10 = arith.constant dense<0.000000e+00> : vector<8xf32>
    %28 = vector.multi_reduction <add>, %27, %cst_10 [1] : vector<8x128xf32> to vector<8xf32>
    %29 = vector.shape_cast %28 : vector<8xf32> to vector<8x1xf32>
    %30 = vector.broadcast %5 : vector<1x128xf32> to vector<8x128xf32>
    %31 = arith.mulf %30, %0 : vector<8x128xf32>
    %32 = arith.addf %24, %31 : vector<8x128xf32>
    %c4_i32_11 = arith.constant 4 : i32
    %33 = vector.broadcast %c4_i32_11 : i32 to vector<8x128xi32>
    %34 = arith.cmpi eq, %20, %33 : vector<8x128xi32>
    %cst_12 = arith.constant -5.000000e-01 : f32
    %35 = vector.broadcast %cst_12 : f32 to vector<8x1xf32>
    %36 = arith.mulf %35, %29 : vector<8x1xf32>
    %cst_13 = arith.constant 0.000000e+00 : f32
    %37 = vector.shape_cast %36 : vector<8x1xf32> to vector<8x1xf32>
    %38 = vector.broadcast %37 : vector<8x1xf32> to vector<8x128xf32>
    %39 = vector.broadcast %cst_13 : f32 to vector<8x128xf32>
    %40 = arith.select %34, %38, %39 : vector<8x128xi1>, vector<8x128xf32>
    %41 = arith.addf %32, %40 : vector<8x128xf32>
    %c0_14 = arith.constant 0 : index
    %c0_15 = arith.constant 0 : index
    %42 = vector.load %arg4[%c0_14, %c0_15] : memref<8x128xf32, #tpu.memory_space<vmem>>, vector<8x128xf32>
    tpu.vector_store %arg4[%c0_14, %c0_15], %41 {strides = array<i32>} : memref<8x128xf32, #tpu.memory_space<vmem>>, vector<8x128xf32>,
    return
  }
  func.func @transform_0(%arg0: i32) -> (i32, i32) {
    %c0_i32 = arith.constant 0 : i32
    %c0_i32_0 = arith.constant 0 : i32
    return %arg0, %c0_i32 : i32, i32
  }
  func.func @transform_1(%arg0: i32) -> (i32, i32) {
    %c0_i32 = arith.constant 0 : i32
    %c0_i32_0 = arith.constant 0 : i32
    %c0_i32_1 = arith.constant 0 : i32
    return %c0_i32, %c0_i32_0 : i32, i32
  }
  func.func @transform_2(%arg0: i32) -> (i32, i32) {
    %c0_i32 = arith.constant 0 : i32
    %c0_i32_0 = arith.constant 0 : i32
    %c0_i32_1 = arith.constant 0 : i32
    return %c0_i32, %c0_i32_0 : i32, i32
  }
  func.func @transform_3(%arg0: i32) -> (i32, i32) {
    %c0_i32 = arith.constant 0 : i32
    %c0_i32_0 = arith.constant 0 : i32
    return %arg0, %c0_i32 : i32, i32
  }
}

</mosaic_0001>

<bundles_post_ra>
// kernel: gaussian_actor_critic_forward.1
= control target key start
LH: loop header
LB: loop body
LE: loop exit
PB: predicated region body
PF: predicated region fallthrough
CT: control target
= control target key end

     0   :  { %8 = vsyncpa [#allocation3], 0  ;;  %s516_s12 = smov [#allocation2]   ;;  %s614_s0 = inlined_call_operand.vmem [shape: f32[8,128], index: 0, kind: input, shape index: {}]   ;;  %s615_s1 = inlined_call_operand.hbm [shape: f32[384,128], index: 1, kind: input, shape index: {}]   ;;  %s616_s2 = inlined_call_operand.vmem [shape: f32[4,128], index: 2, kind: input, shape index: {}]   ;;  %s617_s3 = inlined_call_operand.vmem [shape: f32[8,128], index: 3, kind: output, shape index: {}]  }
   0x1   :  { %s16_s13 = sshll.u32 %s516_s12, 4  ;;  %s17_s13 = int_to_ptr.vmem [resolvable:$true] %s16_s13 }
   0x2   :  { %s502_s14 = scalar_lea.vmem %s17_s13, 6144  ;;  %p507_p1 = scmp.lt.s32.totalorder %s17_s13, %s17_s13 }
   0x3   :  { %p503_p0 = scmp.ne.s32.totalorder %s17_s13, %s502_s14  ;;  %p508_p2 = scmp.lt.s32.totalorder %s502_s14, %s502_s14 }
   0x5   :  { %p509_p3 = por %p508_p2, %p507_p1 }
   0x7   :  { %p510_p4 = pnand %p509_p3, %p503_p0 }
   0x9   :  { %513 = shalt.err (!%p510_p4)
}
   0xa   :  { %s517_s15 = smov 128   ;;  %s518_s16 = smov 8  }
   0xb   :  { %22 = dma.hbm_to_vmem [thread:$0]  %s615_s1, 6144, %s17_s13, [#allocation3], %s517_s15, %s517_s15, %s518_s16  }
   0xc   :  { %514 = dma.done.wait [#allocation3], 6144  }
   0xd   :  { %515 = vsyncadd [#allocation3], 4294961152  ;;  %v519_v0 = vmov 0.0   ;;  %vm520_vm0 = vmmov 0   ;;  %v45_v1 = vld [vmem:[#allocation2 + $0x78] sm:$0xff]  ;;  %v44_v2 = vld [vmem:[#allocation2 + $0x70] sm:$0xff]  ;;  %v46_v41 = vlaneseq }
   0xe   :  { %378 = vmatprep.subr.mxu0 %v519_v0  ;;  %410 = vmatprep.mubr.msk.f32.mxu0 %vm520_vm0, %v519_v0  ;;  %v43_v3 = vld [vmem:[#allocation2 + $0x68] sm:$0xff]  ;;  %v42_v4 = vld [vmem:[#allocation2 + $0x60] sm:$0xff]  ;;  %v41_v5 = vld [vmem:[#allocation2 + $0x58] sm:$0xff] }
   0xf   :  { %413 = vmatprep.subr.mxu1 %v519_v0  ;;  %445 = vmatprep.mubr.msk.f32.mxu1 %vm520_vm0, %v519_v0  ;;  %v136_v6 = vld [vmem:[#allocation2 + $0xf8] sm:$0xff]  ;;  %v135_v7 = vld [vmem:[#allocation2 + $0xf0] sm:$0xff]  ;;  %v134_v9 = vld [vmem:[#allocation2 + $0xe8] sm:$0xff]  ;;  %v47_v42 = vshrl.u32 %v46_v41, 7  ;;  %v303_v59 = vand.u32 127, %v46_v41 }
  0x10   :  { %379 = vmatpush3.msra.mxu0 %v45_v1  ;;  %414 = vmatpush3.msra.mxu1 %v136_v6  ;;  %v40_v8 = vld [vmem:[#allocation2 + $0x50] sm:$0xff]  ;;  %v39_v10 = vld [vmem:[#allocation2 + $0x48] sm:$0xff]  ;;  %v133_v11 = vld [vmem:[#allocation2 + $0xe0] sm:$0xff] }
  0x11   :  { %380 = vmatprep.subr.mxu0 %v519_v0  ;;  %415 = vmatprep.subr.mxu1 %v519_v0  ;;  %v38_v12 = vld [vmem:[#allocation2 + $0x40] sm:$0xff]  ;;  %v132_v13 = vld [vmem:[#allocation2 + $0xd8] sm:$0xff]  ;;  %v131_v15 = vld [vmem:[#allocation2 + $0xd0] sm:$0xff]  ;;  %v48_v43 = vsub.s32 0, %v47_v42  ;;  %vm304_vm1 = vcmp.lt.s32.totalorder %v303_v59, 4  ;;  %v139_v62 = vsub.s32 1, %v47_v42 }
  0x12   :  { %381 = vmatpush3.msra.mxu0 %v44_v2  ;;  %416 = vmatpush3.msra.mxu1 %v135_v7  ;;  %v37_v14 = vld [vmem:[#allocation2 + $0x38] sm:$0xff]  ;;  %v36_v16 = vld [vmem:[#allocation2 + $0x30] sm:$0xff]  ;;  %v130_v17 = vld [vmem:[#allocation2 + $0xc8] sm:$0xff]  ;;  %vm317_vm2 = vcmp.eq.s32.totalorder %v303_v59, 4 }
  0x13   :  { %382 = vmatprep.subr.mxu0 %v519_v0  ;;  %417 = vmatprep.subr.mxu1 %v519_v0  ;;  %v35_v18 = vld [vmem:[#allocation2 + $0x28] sm:$0xff]  ;;  %v34_v19 = vld [vmem:[#allocation2 + $0x20] sm:$0xff]  ;;  %v33_v20 = vld [vmem:[#allocation2 + $0x18] sm:$0xff] }
  0x14   :  { %383 = vmatpush3.msra.mxu0 %v43_v3  ;;  %418 = vmatpush3.msra.mxu1 %v134_v9  ;;  %v32_v21 = vld [vmem:[#allocation2 + $0x10] sm:$0xff]  ;;  %v31_v22 = vld [vmem:[#allocation2 + $0x8] sm:$0xff]  ;;  %v30_v23 = vld [vmem:[#allocation2] sm:$0xff]  ;;  %v313_v9 = vsub.s32 3, %v47_v42 }
  0x15   :  { %384 = vmatprep.subr.mxu0 %v519_v0  ;;  %419 = vmatprep.subr.mxu1 %v519_v0  ;;  %v574_v24 = vld [vmem:[%s614_s0] sm:$0xff]  ;;  %v128_v26 = vld [vmem:[#allocation2 + $0xb8] sm:$0xff]  ;;  %v127_v27 = vld [vmem:[#allocation2 + $0xb0] sm:$0xff] }
  0x16   :  { %385 = vmatpush3.msra.mxu0 %v42_v4  ;;  %420 = vmatpush3.msra.mxu1 %v133_v11  ;;  %v129_v25 = vld [vmem:[#allocation2 + $0xc0] sm:$0xff]  ;;  %v126_v28 = vld [vmem:[#allocation2 + $0xa8] sm:$0xff]  ;;  %v124_v30 = vld [vmem:[#allocation2 + $0x98] sm:$0xff]  ;;  %v307_v60 = vsel %vm304_vm1, %v574_v24, 0.0 }
  0x17   :  { %386 = vmatprep.subr.mxu0 %v519_v0  ;;  %421 = vmatprep.subr.mxu1 %v519_v0  ;;  %v125_v29 = vld [vmem:[#allocation2 + $0xa0] sm:$0xff]  ;;  %v123_v31 = vld [vmem:[#allocation2 + $0x90] sm:$0xff]  ;;  %v122_v32 = vld [vmem:[#allocation2 + $0x88] sm:$0xff]  ;;  %v308_v61 = vmul.f32 %v307_v60, %v307_v60 }
  0x18   :  { %387 = vmatpush3.msra.mxu0 %v41_v5  ;;  %422 = vmatpush3.msra.mxu1 %v132_v13  ;;  %v121_v33 = vld [vmem:[#allocation2 + $0x80] sm:$0xff]  ;;  %v227_v34 = vld [vmem:[#allocation2 + $0x178] sm:$0xff]  ;;  %v226_v35 = vld [vmem:[#allocation2 + $0x170] sm:$0xff]  ;;  %v230_v5 = vsub.s32 2, %v47_v42 }
  0x19   :  { %388 = vmatprep.subr.mxu0 %v519_v0  ;;  %423 = vmatprep.subr.mxu1 %v519_v0  ;;  %v225_v36 = vld [vmem:[#allocation2 + $0x168] sm:$0xff]  ;;  %v224_v37 = vld [vmem:[#allocation2 + $0x160] sm:$0xff]  ;;  %v223_v38 = vld [vmem:[#allocation2 + $0x158] sm:$0xff] }
  0x1a   :  { %389 = vmatpush3.msra.mxu0 %v40_v8  ;;  %424 = vmatpush3.msra.mxu1 %v131_v15  ;;  %v222_v39 = vld [vmem:[#allocation2 + $0x150] sm:$0xff]  ;;  %v221_v40 = vld [vmem:[#allocation2 + $0x148] sm:$0xff]  ;;  %v29_v44 = vld [vmem:[%s616_s2] sm:$0xf] }
  0x1b   :  { %390 = vmatprep.subr.mxu0 %v519_v0  ;;  %425 = vmatprep.subr.mxu1 %v519_v0  ;;  %v49_v45 = vrot.slane %v29_v44, %v48_v43  ;;  %v220_v50 = vld [vmem:[#allocation2 + $0x140] sm:$0xff]  ;;  %v219_v51 = vld [vmem:[#allocation2 + $0x138] sm:$0xff]  ;;  %v218_v52 = vld [vmem:[#allocation2 + $0x130] sm:$0xff]  ;;  %v140_v63 = vrot.slane %v29_v44, %v139_v62  ;;  %v231_v6 = vrot.slane %v29_v44, %v230_v5 }
  0x1c   :  { %391 = vmatpush3.msra.mxu0 %v39_v10  ;;  %426 = vmatpush3.msra.mxu1 %v130_v17  ;;  %v217_v53 = vld [vmem:[#allocation2 + $0x128] sm:$0xff]  ;;  %v216_v54 = vld [vmem:[#allocation2 + $0x120] sm:$0xff]  ;;  %v215_v55 = vld [vmem:[#allocation2 + $0x118] sm:$0xff]  ;;  %v314_v10 = vrot.slane %v29_v44, %v313_v9 }
  0x1d   :  { %392 = vmatprep.subr.mxu0 %v519_v0  ;;  %427 = vmatprep.subr.mxu1 %v519_v0  ;;  %v214_v56 = vld [vmem:[#allocation2 + $0x110] sm:$0xff]  ;;  %v213_v57 = vld [vmem:[#allocation2 + $0x108] sm:$0xff]  ;;  %v212_v58 = vld [vmem:[#allocation2 + $0x100] sm:$0xff] }
  0x1e   :  { %393 = vmatpush3.msra.mxu0 %v38_v12  ;;  %428 = vmatpush3.msra.mxu1 %v129_v25  ;;  %v315_v13 = vmul.f32 %v314_v10, %v574_v24 }
  0x1f   :  { %394 = vmatprep.subr.mxu0 %v519_v0  ;;  %429 = vmatprep.subr.mxu1 %v519_v0 }
  0x20   :  { %395 = vmatpush3.msra.mxu0 %v37_v14  ;;  %430 = vmatpush3.msra.mxu1 %v128_v26 }
  0x21   :  { %396 = vmatprep.subr.mxu0 %v519_v0  ;;  %431 = vmatprep.subr.mxu1 %v519_v0 }
  0x22   :  { %397 = vmatpush3.msra.mxu0 %v36_v16  ;;  %432 = vmatpush3.msra.mxu1 %v127_v27 }
  0x23   :  { %398 = vmatprep.subr.mxu0 %v519_v0  ;;  %433 = vmatprep.subr.mxu1 %v519_v0 }
  0x24   :  { %399 = vmatpush3.msra.mxu0 %v35_v18  ;;  %434 = vmatpush3.msra.mxu1 %v126_v28 }
  0x25   :  { %400 = vmatprep.subr.mxu0 %v519_v0  ;;  %435 = vmatprep.subr.mxu1 %v519_v0 }
  0x26   :  { %401 = vmatpush3.msra.mxu0 %v34_v19  ;;  %436 = vmatpush3.msra.mxu1 %v125_v29 }
  0x27   :  { %402 = vmatprep.subr.mxu0 %v519_v0  ;;  %437 = vmatprep.subr.mxu1 %v519_v0 }
  0x28   :  { %403 = vmatpush3.msra.mxu0 %v33_v20  ;;  %438 = vmatpush3.msra.mxu1 %v124_v30 }
  0x29   :  { %404 = vmatprep.subr.mxu0 %v519_v0  ;;  %439 = vmatprep.subr.mxu1 %v519_v0 }
  0x2a   :  { %405 = vmatpush3.msra.mxu0 %v32_v21  ;;  %440 = vmatpush3.msra.mxu1 %v123_v31 }
  0x2b   :  { %406 = vmatprep.subr.mxu0 %v519_v0  ;;  %441 = vmatprep.subr.mxu1 %v519_v0 }
  0x2c   :  { %407 = vmatpush3.msra.mxu0 %v31_v22  ;;  %442 = vmatpush3.msra.mxu1 %v122_v32 }
  0x2d   :  { %408 = vmatprep.subr.mxu0 %v519_v0  ;;  %443 = vmatprep.subr.mxu1 %v519_v0 }
  0x2e   :  { %409 = vmatpush3.msra.mxu0 %v30_v23  ;;  %444 = vmatpush3.msra.mxu1 %v121_v33 }
  0x2f   :  { %411 = vmatmul.mubr.f32.vlgmr.msra.gmra.mxu0 %v574_v24  ;;  %448 = vmatprep.subr.mxu0 %v519_v0 }
  0x30   :  { %480 = vmatprep.mubr.msk.f32.mxu0 %vm520_vm0, %v519_v0  ;;  %449 = vmatpush3.msra.mxu0 %v227_v34 }
  0x31   :  { %450 = vmatprep.subr.mxu0 %v519_v0  ;;  %309 = vadd.xlane.f32.xlu0 %v308_v61 }
  0x32   :  { %451 = vmatpush3.msra.mxu0 %v226_v35 }
  0x33   :  { %452 = vmatprep.subr.mxu0 %v519_v0 }
  0x34   :  { %453 = vmatpush3.msra.mxu0 %v225_v36 }
  0x35   :  { %454 = vmatprep.subr.mxu0 %v519_v0 }
  0x36   :  { %455 = vmatpush3.msra.mxu0 %v224_v37 }
  0x37   :  { %456 = vmatprep.subr.mxu0 %v519_v0 }
  0x38   :  { %457 = vmatpush3.msra.mxu0 %v223_v38 }
  0x39   :  { %458 = vmatprep.subr.mxu0 %v519_v0 }
  0x3a   :  { %459 = vmatpush3.msra.mxu0 %v222_v39 }
  0x3b   :  { %460 = vmatprep.subr.mxu0 %v519_v0 }
  0x3c   :  { %461 = vmatpush3.msra.mxu0 %v221_v40 }
  0x3d   :  { %462 = vmatprep.subr.mxu0 %v519_v0 }
  0x3e   :  { %463 = vmatpush3.msra.mxu0 %v220_v50 }
  0x3f   :  { %464 = vmatprep.subr.mxu0 %v519_v0 }
  0x40   :  { %465 = vmatpush3.msra.mxu0 %v219_v51 }
  0x41   :  { %466 = vmatprep.subr.mxu0 %v519_v0 }
  0x42   :  { %467 = vmatpush3.msra.mxu0 %v218_v52 }
  0x43   :  { %468 = vmatprep.subr.mxu0 %v519_v0 }
  0x44   :  { %469 = vmatpush3.msra.mxu0 %v217_v53 }
  0x45   :  { %470 = vmatprep.subr.mxu0 %v519_v0 }
  0x46   :  { %471 = vmatpush3.msra.mxu0 %v216_v54 }
  0x47   :  { %472 = vmatprep.subr.mxu0 %v519_v0 }
  0x48   :  { %473 = vmatpush3.msra.mxu0 %v215_v55 }
  0x49   :  { %474 = vmatprep.subr.mxu0 %v519_v0 }
  0x4a   :  { %475 = vmatpush3.msra.mxu0 %v214_v56 }
  0x4b   :  { %476 = vmatprep.subr.mxu0 %v519_v0 }
  0x4c   :  { %477 = vmatpush3.msra.mxu0 %v213_v57 }
  0x4d   :  { %478 = vmatprep.subr.mxu0 %v519_v0 }
  0x4e   :  { %479 = vmatpush3.msra.mxu0 %v212_v58 }
  0xba   :  { %v310_v11 = vpop.xlane.xlu0 %309 }
  0xbb   :  { %v318_v12 = vmul.f32 -0.5, %v310_v11 }
  0xbd   :  { %v319_v16 = vsel %vm317_vm2, %v318_v12, 0.0 }
  0xef   :  { %v116_v46 = vpop.f32.mrf.mxu0 }
  0xf0   :  { %v117_v47 = vadd.f32 %v116_v46, %v49_v45 }
  0xf1   :  { %v412_v48 = vpop.f32.mrf.mxu0 }
  0xf2   :  { %488 = vtanh.f32 %v117_v47 }
  0xff   :  { %v489_v49 = vpop.eup %488 }
 0x100   :  { %446 = vmatmul.mubr.f32.vlgmr.msra.gmra.mxu1 %v489_v49 }
 0x1c0   :  { %v207_v1 = vpop.f32.mrf.mxu1 }
 0x1c1   :  { %v208_v2 = vadd.f32 %v207_v1, %v140_v63 }
 0x1c2   :  { %v447_v3 = vpop.f32.mrf.mxu1 }
 0x1c3   :  { %490 = vtanh.f32 %v208_v2 }
 0x1d0   :  { %v491_v4 = vpop.eup %490 }
 0x1d1   :  { %481 = vmatmul.mubr.f32.vlgmr.msra.gmra.mxu0 %v491_v4 }
 0x291   :  { %v298_v7 = vpop.f32.mrf.mxu0 }
 0x292   :  { %v299_v0 = vadd.f32 %v298_v7, %v231_v6 }
 0x293   :  { %v482_v8 = vpop.f32.mrf.mxu0 }
 0x294   :  { %492 = vtanh.f32 %v299_v0 }
 0x2a1   :  { %v493_v14 = vpop.eup %492 }
 0x2a2   :  { %v306_v15 = vsel %vm304_vm1, %v493_v14, %v299_v0 }
 0x2a3   :  { %v316_v17 = vadd.f32 %v315_v13, %v306_v15 }
 0x2a5   :  { %v320_v18 = vadd.f32 %v319_v16, %v316_v17 }
 0x2a7   :  { %321 = vst [vmem:[%s617_s3] sm:$0xff] %v320_v18 }
 0x2a8   :  { %326 = vsyncpa [#allocation3], 1 }

</bundles_post_ra>
